<compile_context>
chip_gen: v5e
topology: v5e:2x2
jax: 0.10.0
libtpu: 0.0.40
codegen_flags: <defaults>
</compile_context>

<pallas_src>
import jax
import jax.numpy as jnp
from jax.experimental import pallas as pl
from jax.experimental.pallas import tpu as pltpu


def _round_up(x, m):
    return (x + m - 1) // m * m


def mlp_kernel(x_ref, w1_ref, b1_ref, w2_ref, b2_ref, o_ref):
    # In-kernel cast f32 -> bf16 (VPU, hides under the MXU) instead of a
    # wrapper-side cast that would round-trip x through HBM.
    x = x_ref[...].astype(w1_ref.dtype)
    # Layer 1: (TILE_B, in) @ (in, hid_p) -> f32 accumulation on the MXU.
    h = jnp.dot(x, w1_ref[...], preferred_element_type=jnp.float32)
    h = h + b1_ref[...]                       # b1 (1, hid_p) broadcast over rows
    # Dropout(0.5) in eval mode == identity.
    h = jnp.maximum(h, 0.0)                   # ReLU (padded channels stay 0)
    # Layer 2: (TILE_B, hid_p) @ (hid_p, out_p) -> f32 accumulation.
    out = jnp.dot(h.astype(w2_ref.dtype), w2_ref[...],
                  preferred_element_type=jnp.float32)
    o_ref[...] = (out + b2_ref[...]).astype(o_ref.dtype)


def prepare_params(w1, b1, w2, b2, compute_dtype=jnp.bfloat16, lane_multiple=128):
    """One-time param prep (do NOT call per-forward):
    transpose to (in, hid)/(hid, out), cast to bf16, zero-pad hidden and output
    feature dims to lane-dense multiples of `lane_multiple` (128; use 256 on v6e
    for very large layers). Zero-padded hidden channels are exact no-ops."""
    hid, in_f = w1.shape
    out_f = w2.shape[0]
    hid_p = _round_up(hid, lane_multiple)
    out_p = _round_up(out_f, lane_multiple)

    w1_t = jnp.zeros((in_f, hid_p), compute_dtype)
    w1_t = w1_t.at[:, :hid].set(w1.T.astype(compute_dtype))          # (in, hid_p)
    b1_p = jnp.zeros((1, hid_p), jnp.float32)
    b1_p = b1_p.at[:, :hid].set(b1.astype(jnp.float32))              # (1, hid_p)
    w2_t = jnp.zeros((hid_p, out_p), compute_dtype)
    w2_t = w2_t.at[:hid, :out_f].set(w2.T.astype(compute_dtype))     # (hid_p, out_p)
    b2_p = jnp.zeros((1, out_p), jnp.float32)
    b2_p = b2_p.at[:, :out_f].set(b2.astype(jnp.float32))            # (1, out_p)
    return w1_t, b1_p, w2_t, b2_p, out_f


def _vmem_capacity_bytes():
    try:
        info = pltpu.get_tpu_info()
        return int(getattr(info, "vmem_capacity_bytes", 64 << 20))
    except Exception:
        return 64 << 20  # conservative: v7x per-TC VMEM


def _make_specs(tb, in_f, hid_p, out_p, resident_single_buffer):
    tile_map = lambda i: (i, 0)     # x / out: streamed per batch tile
    const_map = lambda i: (0, 0)    # params: resident across all tiles

    def const_spec(shape):
        if resident_single_buffer:
            try:
                # Constant block -> no need for double buffering: halves the
                # resident-weight VMEM footprint.
                return pl.BlockSpec(shape, const_map,
                                    pipeline_mode=pl.Buffered(1))
            except Exception:
                pass
        return pl.BlockSpec(shape, const_map)

    in_specs = [
        pl.BlockSpec((tb, in_f), tile_map),     # x tile (pipelined, f32)
        const_spec((in_f, hid_p)),              # W1^T resident (bf16)
        const_spec((1, hid_p)),                 # b1 resident (f32)
        const_spec((hid_p, out_p)),             # W2^T resident (bf16)
        const_spec((1, out_p)),                 # b2 resident (f32)
    ]
    out_spec = pl.BlockSpec((tb, out_p), tile_map)
    return in_specs, out_spec


def mlp_forward(x, params, tile_b=512, out_dtype=None):
    """x: (B, in_features) float32; params from prepare_params().
    out_dtype: output dtype (default x.dtype). Pass jnp.bfloat16 to halve
    output HBM write traffic when the consumer tolerates it."""
    w1_t, b1_p, w2_t, b2_p, out_f = params
    B, in_f = x.shape
    hid_p = w1_t.shape[1]
    out_p = w2_t.shape[1]
    out_dtype = x.dtype if out_dtype is None else out_dtype
    o_bytes = jnp.dtype(out_dtype).itemsize
    w_bytes = jnp.dtype(w1_t.dtype).itemsize
    x_bytes = jnp.dtype(x.dtype).itemsize

    # --- choose batch tile (multiple of 16 for bf16 sublane packing) --------
    vmem_cap = _vmem_capacity_bytes()
    vmem_budget = (vmem_cap * 3) // 4
    resident = (w_bytes * (in_f * hid_p + hid_p * out_p)
                + 4 * (hid_p + out_p))                       # single-buffered

    def footprint(t):
        streamed = 2 * t * in_f * x_bytes + 2 * t * out_p * o_bytes
        scratch = t * hid_p * 4 + t * out_p * 4              # h + out intermediates
        return resident + streamed + scratch

    tb = _round_up(min(tile_b, _round_up(B, 16)), 16)
    while tb > 16 and footprint(tb) > vmem_budget:
        tb = _round_up(tb // 2, 16)

    fp = footprint(tb)
    vmem_limit = min(max(fp + (16 << 20), 32 << 20), vmem_budget)
    vmem_limit = int(max(vmem_limit, fp + (4 << 20)))        # never starve the kernel

    grid = (pl.cdiv(B, tb),)   # ragged last tile handled by masked partial stores

    cost = pl.CostEstimate(
        flops=2 * B * (in_f * hid_p + hid_p * out_p),
        transcendentals=0,
        bytes_accessed=(B * in_f * x_bytes
                        + w_bytes * (in_f * hid_p + hid_p * out_p)
                        + 4 * (hid_p + out_p)
                        + B * out_p * o_bytes),
    )

    def _run(single_buffer):
        in_specs, out_spec = _make_specs(tb, in_f, hid_p, out_p, single_buffer)
        return pl.pallas_call(
            mlp_kernel,
            out_shape=jax.ShapeDtypeStruct((B, out_p), out_dtype),
            grid=grid,
            in_specs=in_specs,
            out_specs=out_spec,
            compiler_params=pltpu.CompilerParams(
                # batch axis -> both TCs on v7x; no-op on v5e/v6e.
                # TODO(synk): use pltpu.CORE_PARALLEL if profiling shows one TC idle.
                dimension_semantics=("parallel",),
                vmem_limit_bytes=vmem_limit,
            ),
            cost_estimate=cost,
        )(x, w1_t, b1_p, w2_t, b2_p)

    try:
        out = _run(True)
    except Exception:
        out = _run(False)   # fall back to default double-buffered residents

    # Strip lane padding of the output features (rows already exact: grid masks).
    if out_p != out_f:
        out = out[:, :out_f]
    return out


def init_params(key, input_size, output_size):
    """Deterministic init matching nn.Linear shapes (uniform +-1/sqrt(fan_in))."""
    hidden = input_size // 2
    k1, k2, k3, k4 = jax.random.split(key, 4)
    lim1 = 1.0 / jnp.sqrt(jnp.float32(input_size))
    lim2 = 1.0 / jnp.sqrt(jnp.float32(hidden))
    w1 = jax.random.uniform(k1, (hidden, input_size), jnp.float32, -lim1, lim1)
    b1 = jax.random.uniform(k2, (hidden,), jnp.float32, -lim1, lim1)
    w2 = jax.random.uniform(k3, (output_size, hidden), jnp.float32, -lim2, lim2)
    b2 = jax.random.uniform(k4, (output_size,), jnp.float32, -lim2, lim2)
    return w1, b1, w2, b2


if __name__ == "__main__":
    key = jax.random.PRNGKey(0)
    batch, input_size, output_size = 4, 32, 8

    kx, kp = jax.random.split(key)
    x = jax.random.normal(kx, (batch, input_size), jnp.float32)
    w1, b1, w2, b2 = init_params(kp, input_size, output_size)

    params = prepare_params(w1, b1, w2, b2)          # one-time prep
    out = mlp_forward(x, params)
    out = jax.block_until_ready(out)

    # Reference in plain JAX with the same bf16 quantization of operands
    # (eval-mode dropout = identity). Only accumulation order should differ.
    f32 = jnp.float32
    xq = x.astype(jnp.bfloat16).astype(f32)
    w1q = w1.astype(jnp.bfloat16).astype(f32)
    w2q = w2.astype(jnp.bfloat16).astype(f32)
    h_ref = jnp.maximum(xq @ w1q.T + b1, 0.0)
    h_refq = h_ref.astype(jnp.bfloat16).astype(f32)
    ref = h_refq @ w2q.T + b2

    assert out.shape == (batch, output_size)
    assert jnp.allclose(out, ref, atol=1e-3, rtol=1e-3), (
        f"max abs err {jnp.max(jnp.abs(out - ref))}")

    print("KERNEL_OK")
</pallas_src>

<mosaic_0001>
module attributes {stable_mosaic.version = 11 : i64} {
  func.func @mlp_kernel(%arg0: i32, %arg1: memref<16x32xf32, #tpu.memory_space<vmem>>, %arg2: memref<32x128xbf16, #tpu.memory_space<vmem>>, %arg3: memref<1x128xf32, #tpu.memory_space<vmem>>, %arg4: memref<128x128xbf16, #tpu.memory_space<vmem>>, %arg5: memref<1x128xf32, #tpu.memory_space<vmem>>, %arg6: memref<16x128xf32, #tpu.memory_space<vmem>>) attributes {dimension_semantics = [#tpu.dimension_semantics<parallel>], iteration_bounds = array<i64: 1>, scalar_prefetch = 0 : i64, scratch_operands = 0 : i64, tpu.core_type = #tpu.core_type<tc>, window_params = [{transform_indices = @transform_0, window_bounds = array<i64: 16, 32>}, {pipeline_mode = #tpu.pipeline_mode<synchronous>, transform_indices = @transform_1, window_bounds = array<i64: 32, 128>}, {pipeline_mode = #tpu.pipeline_mode<synchronous>, transform_indices = @transform_2, window_bounds = array<i64: 1, 128>}, {pipeline_mode = #tpu.pipeline_mode<synchronous>, transform_indices = @transform_3, window_bounds = array<i64: 128, 128>}, {pipeline_mode = #tpu.pipeline_mode<synchronous>, transform_indices = @transform_4, window_bounds = array<i64: 1, 128>}, {transform_indices = @transform_5, window_bounds = array<i64: 16, 128>}]} {
    %c0 = arith.constant 0 : index
    %c0_0 = arith.constant 0 : index
    %0 = vector.load %arg1[%c0, %c0_0] : memref<16x32xf32, #tpu.memory_space<vmem>>, vector<16x32xf32>
    %1 = arith.truncf %0 : vector<16x32xf32> to vector<16x32xbf16>
    %c0_1 = arith.constant 0 : index
    %c0_2 = arith.constant 0 : index
    %2 = vector.load %arg2[%c0_1, %c0_2] : memref<32x128xbf16, #tpu.memory_space<vmem>>, vector<32x128xbf16>
    %cst = arith.constant dense<0.000000e+00> : vector<16x128xf32>
    %3 = tpu.matmul %1, %2, %cst {dimension_numbers = #tpu.dot_dimension_numbers<[1], [0], [0], [1], [0, 0, 1, 1], [], []>} : vector<16x32xbf16>, vector<32x128xbf16>, vector<16x128xf32> -> vector<16x128xf32>
    %c0_3 = arith.constant 0 : index
    %c0_4 = arith.constant 0 : index
    %4 = vector.load %arg3[%c0_3, %c0_4] : memref<1x128xf32, #tpu.memory_space<vmem>>, vector<1x128xf32>
    %5 = vector.broadcast %4 : vector<1x128xf32> to vector<16x128xf32>
    %6 = arith.addf %3, %5 : vector<16x128xf32>
    %cst_5 = arith.constant 0.000000e+00 : f32
    %7 = vector.broadcast %cst_5 : f32 to vector<16x128xf32>
    %8 = arith.maximumf %6, %7 : vector<16x128xf32>
    %9 = arith.truncf %8 : vector<16x128xf32> to vector<16x128xbf16>
    %c0_6 = arith.constant 0 : index
    %c0_7 = arith.constant 0 : index
    %10 = vector.load %arg4[%c0_6, %c0_7] : memref<128x128xbf16, #tpu.memory_space<vmem>>, vector<128x128xbf16>
    %cst_8 = arith.constant dense<0.000000e+00> : vector<16x128xf32>
    %11 = tpu.matmul %9, %10, %cst_8 {dimension_numbers = #tpu.dot_dimension_numbers<[1], [0], [0], [1], [0, 0, 1, 1], [], []>} : vector<16x128xbf16>, vector<128x128xbf16>, vector<16x128xf32> -> vector<16x128xf32>
    %c0_9 = arith.constant 0 : index
    %c0_10 = arith.constant 0 : index
    %12 = vector.load %arg5[%c0_9, %c0_10] : memref<1x128xf32, #tpu.memory_space<vmem>>, vector<1x128xf32>
    %13 = vector.broadcast %12 : vector<1x128xf32> to vector<16x128xf32>
    %14 = arith.addf %11, %13 : vector<16x128xf32>
    %c0_11 = arith.constant 0 : index
    %c0_12 = arith.constant 0 : index
    %15 = vector.load %arg6[%c0_11, %c0_12] : memref<16x128xf32, #tpu.memory_space<vmem>>, vector<16x128xf32>
    tpu.vector_store %arg6[%c0_11, %c0_12], %14 {strides = array<i32>} : memref<16x128xf32, #tpu.memory_space<vmem>>, vector<16x128xf32>,
    return
  }
  func.func @transform_0(%arg0: i32) -> (i32, i32) {
    %c0_i32 = arith.constant 0 : i32
    %c0_i32_0 = arith.constant 0 : i32
    return %arg0, %c0_i32 : i32, i32
  }
  func.func @transform_1(%arg0: i32) -> (i32, i32) {
    %c0_i32 = arith.constant 0 : i32
    %c0_i32_0 = arith.constant 0 : i32
    %c0_i32_1 = arith.constant 0 : i32
    return %c0_i32, %c0_i32_0 : i32, i32
  }
  func.func @transform_2(%arg0: i32) -> (i32, i32) {
    %c0_i32 = arith.constant 0 : i32
    %c0_i32_0 = arith.constant 0 : i32
    %c0_i32_1 = arith.constant 0 : i32
    return %c0_i32, %c0_i32_0 : i32, i32
  }
  func.func @transform_3(%arg0: i32) -> (i32, i32) {
    %c0_i32 = arith.constant 0 : i32
    %c0_i32_0 = arith.constant 0 : i32
    %c0_i32_1 = arith.constant 0 : i32
    return %c0_i32, %c0_i32_0 : i32, i32
  }
  func.func @transform_4(%arg0: i32) -> (i32, i32) {
    %c0_i32 = arith.constant 0 : i32
    %c0_i32_0 = arith.constant 0 : i32
    %c0_i32_1 = arith.constant 0 : i32
    return %c0_i32, %c0_i32_0 : i32, i32
  }
  func.func @transform_5(%arg0: i32) -> (i32, i32) {
    %c0_i32 = arith.constant 0 : i32
    %c0_i32_0 = arith.constant 0 : i32
    return %arg0, %c0_i32 : i32, i32
  }
}

module attributes {stable_mosaic.version = 11 : i64} {
  func.func @mlp_kernel(%arg0: i32, %arg1: memref<16x32xf32, #tpu.memory_space<vmem>>, %arg2: memref<32x128xbf16, #tpu.memory_space<vmem>>, %arg3: memref<1x128xf32, #tpu.memory_space<vmem>>, %arg4: memref<128x128xbf16, #tpu.memory_space<vmem>>, %arg5: memref<1x128xf32, #tpu.memory_space<vmem>>, %arg6: memref<16x128xf32, #tpu.memory_space<vmem>>) attributes {dimension_semantics = [#tpu.dimension_semantics<parallel>], iteration_bounds = array<i64: 1>, scalar_prefetch = 0 : i64, scratch_operands = 0 : i64, tpu.core_type = #tpu.core_type<tc>, window_params = [{transform_indices = @transform_0, window_bounds = array<i64: 16, 32>}, {pipeline_mode = #tpu.pipeline_mode<synchronous>, transform_indices = @transform_1, window_bounds = array<i64: 32, 128>}, {pipeline_mode = #tpu.pipeline_mode<synchronous>, transform_indices = @transform_2, window_bounds = array<i64: 1, 128>}, {pipeline_mode = #tpu.pipeline_mode<synchronous>, transform_indices = @transform_3, window_bounds = array<i64: 128, 128>}, {pipeline_mode = #tpu.pipeline_mode<synchronous>, transform_indices = @transform_4, window_bounds = array<i64: 1, 128>}, {transform_indices = @transform_5, window_bounds = array<i64: 16, 128>}]} {
    %c0 = arith.constant 0 : index
    %c0_0 = arith.constant 0 : index
    %0 = vector.load %arg1[%c0, %c0_0] : memref<16x32xf32, #tpu.memory_space<vmem>>, vector<16x32xf32>
    %1 = arith.truncf %0 : vector<16x32xf32> to vector<16x32xbf16>
    %c0_1 = arith.constant 0 : index
    %c0_2 = arith.constant 0 : index
    %2 = vector.load %arg2[%c0_1, %c0_2] : memref<32x128xbf16, #tpu.memory_space<vmem>>, vector<32x128xbf16>
    %cst = arith.constant dense<0.000000e+00> : vector<16x128xf32>
    %3 = tpu.matmul %1, %2, %cst {dimension_numbers = #tpu.dot_dimension_numbers<[1], [0], [0], [1], [0, 0, 1, 1], [], []>} : vector<16x32xbf16>, vector<32x128xbf16>, vector<16x128xf32> -> vector<16x128xf32>
    %c0_3 = arith.constant 0 : index
    %c0_4 = arith.constant 0 : index
    %4 = vector.load %arg3[%c0_3, %c0_4] : memref<1x128xf32, #tpu.memory_space<vmem>>, vector<1x128xf32>
    %5 = vector.broadcast %4 : vector<1x128xf32> to vector<16x128xf32>
    %6 = arith.addf %3, %5 : vector<16x128xf32>
    %cst_5 = arith.constant 0.000000e+00 : f32
    %7 = vector.broadcast %cst_5 : f32 to vector<16x128xf32>
    %8 = arith.maximumf %6, %7 : vector<16x128xf32>
    %9 = arith.truncf %8 : vector<16x128xf32> to vector<16x128xbf16>
    %c0_6 = arith.constant 0 : index
    %c0_7 = arith.constant 0 : index
    %10 = vector.load %arg4[%c0_6, %c0_7] : memref<128x128xbf16, #tpu.memory_space<vmem>>, vector<128x128xbf16>
    %cst_8 = arith.constant dense<0.000000e+00> : vector<16x128xf32>
    %11 = tpu.matmul %9, %10, %cst_8 {dimension_numbers = #tpu.dot_dimension_numbers<[1], [0], [0], [1], [0, 0, 1, 1], [], []>} : vector<16x128xbf16>, vector<128x128xbf16>, vector<16x128xf32> -> vector<16x128xf32>
    %c0_9 = arith.constant 0 : index
    %c0_10 = arith.constant 0 : index
    %12 = vector.load %arg5[%c0_9, %c0_10] : memref<1x128xf32, #tpu.memory_space<vmem>>, vector<1x128xf32>
    %13 = vector.broadcast %12 : vector<1x128xf32> to vector<16x128xf32>
    %14 = arith.addf %11, %13 : vector<16x128xf32>
    %c0_11 = arith.constant 0 : index
    %c0_12 = arith.constant 0 : index
    %15 = vector.load %arg6[%c0_11, %c0_12] : memref<16x128xf32, #tpu.memory_space<vmem>>, vector<16x128xf32>
    tpu.vector_store %arg6[%c0_11, %c0_12], %14 {strides = array<i32>} : memref<16x128xf32, #tpu.memory_space<vmem>>, vector<16x128xf32>,
    return
  }
  func.func @transform_0(%arg0: i32) -> (i32, i32) {
    %c0_i32 = arith.constant 0 : i32
    %c0_i32_0 = arith.constant 0 : i32
    return %arg0, %c0_i32 : i32, i32
  }
  func.func @transform_1(%arg0: i32) -> (i32, i32) {
    %c0_i32 = arith.constant 0 : i32
    %c0_i32_0 = arith.constant 0 : i32
    %c0_i32_1 = arith.constant 0 : i32
    return %c0_i32, %c0_i32_0 : i32, i32
  }
  func.func @transform_2(%arg0: i32) -> (i32, i32) {
    %c0_i32 = arith.constant 0 : i32
    %c0_i32_0 = arith.constant 0 : i32
    %c0_i32_1 = arith.constant 0 : i32
    return %c0_i32, %c0_i32_0 : i32, i32
  }
  func.func @transform_3(%arg0: i32) -> (i32, i32) {
    %c0_i32 = arith.constant 0 : i32
    %c0_i32_0 = arith.constant 0 : i32
    %c0_i32_1 = arith.constant 0 : i32
    return %c0_i32, %c0_i32_0 : i32, i32
  }
  func.func @transform_4(%arg0: i32) -> (i32, i32) {
    %c0_i32 = arith.constant 0 : i32
    %c0_i32_0 = arith.constant 0 : i32
    %c0_i32_1 = arith.constant 0 : i32
    return %c0_i32, %c0_i32_0 : i32, i32
  }
  func.func @transform_5(%arg0: i32) -> (i32, i32) {
    %c0_i32 = arith.constant 0 : i32
    %c0_i32_0 = arith.constant 0 : i32
    return %arg0, %c0_i32 : i32, i32
  }
}

</mosaic_0001>

<bundles_post_ra>
// kernel: tpu_custom_call.1
= control target key start
LH: loop header
LB: loop body
LE: loop exit
PB: predicated region body
PF: predicated region fallthrough
CT: control target
= control target key end

     0   :  { %10 = vsyncpa [#allocation3], 0  ;;  %s444_s0 = inlined_call_operand.hbm [shape: f32[4,32], index: 0, kind: input, shape index: {}]   ;;  %s445_s1 = inlined_call_operand.hbm [shape: bf16[32,128], index: 1, kind: input, shape index: {}]   ;;  %s446_s2 = inlined_call_operand.vmem [shape: f32[1,128], index: 2, kind: input, shape index: {}]   ;;  %s447_s3 = inlined_call_operand.hbm [shape: bf16[128,128], index: 3, kind: input, shape index: {}]   ;;  %s448_s4 = inlined_call_operand.vmem [shape: f32[1,128], index: 4, kind: input, shape index: {}]   ;;  %s449_s5 = inlined_call_operand.hbm [shape: f32[4,128], index: 5, kind: output, shape index: {}]  }
   0x1   :  { %11 = vsyncpa [#allocation6], 0 }
   0x2   :  { %12 = vsyncpa [#allocation4], 0 }
   0x3   :  { %16 = vsyncadd [#allocation3], 192  ;;  %s30_s20 = sshll.u32 %s445_s1, 4  ;;  %s378_s21 = smov [#allocation5]   ;;  %s31_s20 = int_to_ptr.hbm [resolvable:$true] %s30_s20 }
   0x4   :  { %s32_s22 = sshll.u32 %s378_s21, 4  ;;  %s17_s25 = sshll.u32 %s444_s0, 4  ;;  %s33_s22 = int_to_ptr.vmem [resolvable:$true] %s32_s22  ;;  %s18_s25 = int_to_ptr.hbm [resolvable:$true] %s17_s25 }
   0x5   :  { %s379_s26 = smov 64   ;;  %s380_s27 = smov 4  }
   0x6   :  { %38 = dma.hbm_to_vmem [thread:$0]  %s31_s20, 256, %s33_s22, [#allocation6], %s379_s26, %s379_s26, %s380_s27  }
   0x7   :  { %s381_s28 = smov [#allocation2]   ;;  %s45_s1 = sshll.u32 %s447_s3, 4  ;;  %s46_s1 = int_to_ptr.hbm [resolvable:$true] %s45_s1 }
   0x8   :  { %s19_s29 = sshll.u32 %s381_s28, 4  ;;  %s382_s0 = smov [#allocation7]   ;;  %s20_s29 = int_to_ptr.vmem [resolvable:$true] %s19_s29 }
   0x9   :  { %25 = dma.hbm_to_vmem [thread:$0]  %s18_s25, 64, %s20_s29, [#allocation3], %s379_s26, %s379_s26, %s380_s27  }
   0xa   :  { %s47_s7 = sshll.u32 %s382_s0, 4  ;;  %s48_s7 = int_to_ptr.vmem [resolvable:$true] %s47_s7 }
   0xb   :  { %53 = dma.hbm_to_vmem [thread:$0]  %s46_s1, 1024, %s48_s7, [#allocation6], %s379_s26, %s379_s26, %s380_s27  }
   0xc   :  { %372 = dma.done.wait [#allocation3], 256  }
   0xd   :  { %373 = vsyncadd [#allocation3], 4294967040 }
   0xe   :  { %374 = dma.done.wait [#allocation6], 1280  }
   0xf   :  { %375 = vsyncadd [#allocation6], 4294966016  ;;  %v259_v0 = vld [vmem:[#allocation5 + $0x8] sm:$0xff]  ;;  %v258_v1 = vld [vmem:[#allocation5] sm:$0xff]  ;;  %vm92_vm0 = vcmask 261120  }
  0x10   :  { %v267_v2 = vld [vmem:[#allocation7 + $0x38] sm:$0xff]  ;;  %102 = vmatpush.bf16.msra.mxu0 %v259_v0  ;;  %v69_v3 = vld [vmem:[#allocation2] sm:$0xff]  ;;  %v70_v4 = vld [vmem:[#allocation2 + $0x8] sm:$0xff] }
  0x11   :  { %181 = vmatpush.bf16.msra.mxu1 %v267_v2  ;;  %v266_v5 = vld [vmem:[#allocation7 + $0x30] sm:$0xff]  ;;  %v71_v6 = vpack.c.bf16 %v70_v4, %v69_v3  ;;  %v265_v7 = vld [vmem:[#allocation7 + $0x28] sm:$0xff]  ;;  %v264_v8 = vld [vmem:[#allocation7 + $0x20] sm:$0xff] }
  0x12   :  { %v263_v9 = vld [vmem:[#allocation7 + $0x18] sm:$0xff]  ;;  %v262_v10 = vld [vmem:[#allocation7 + $0x10] sm:$0xff]  ;;  %v261_v11 = vld [vmem:[#allocation7 + $0x8] sm:$0xff] }
  0x13   :  { %v260_v12 = vld [vmem:[#allocation7] sm:$0xff] }
  0x14   :  { %103 = vmatpush.bf16.msra.mxu0 %v258_v1  ;;  %v274_v14 = vld [vmem:[%s446_s2] ss:$0 sm:$0xff] }
  0x15   :  { %182 = vmatpush.bf16.msra.mxu1 %v266_v5  ;;  %v275_v21 = vld [vmem:[%s448_s4] ss:$0 sm:$0xff] }
  0x17   :  { %225 = vmatmul.msk.bf16.vlgmr.msra.gmra.mxu0 %vm92_vm0, %v71_v6 }
  0x19   :  { %183 = vmatpush.bf16.msra.mxu1 %v265_v7 }
  0x1d   :  { %184 = vmatpush.bf16.msra.mxu1 %v264_v8 }
  0x21   :  { %185 = vmatpush.bf16.msra.mxu1 %v263_v9 }
  0x25   :  { %186 = vmatpush.bf16.msra.mxu1 %v262_v10 }
  0x29   :  { %187 = vmatpush.bf16.msra.mxu1 %v261_v11 }
  0x2d   :  { %188 = vmatpush.bf16.msra.mxu1 %v260_v12 }
  0x94   :  { %v105_v13 = vpop.f32.mrf.mxu0 }
  0x95   :  { %v106_v15 = vadd.f32 %v274_v14, %v105_v13 }
  0x97   :  { %v110_v18 = vmax.f32 %v106_v15, 0.0 }
  0x9c   :  { %v107_v16 = vpop.f32.mrf.mxu0 }
  0x9d   :  { %v108_v17 = vadd.f32 %v274_v14, %v107_v16 }
  0x9f   :  { %v111_v19 = vmax.f32 %v108_v17, 0.0 }
  0xa1   :  { %v112_v20 = vpack.c.bf16 %v111_v19, %v110_v18 }
  0xa3   :  { %189 = vmatmul.bf16.vlgmr.msra.gmra.mxu1 %v112_v20 }
 0x120   :  { %v190_v22 = vpop.f32.mrf.mxu1 }
 0x121   :  { %v191_v23 = vadd.f32 %v275_v21, %v190_v22 }
 0x123   :  { %195 = vst [vmem:[#allocation8] sm:$0xff] %v191_v23 }
 0x128   :  { %v192_v24 = vpop.f32.mrf.mxu1 }
 0x129   :  { %v193_v25 = vadd.f32 %v275_v21, %v192_v24 }
 0x12b   :  { %196 = vst [vmem:[#allocation8 + $0x8] sm:$0xff] %v193_v25 }
 0x12c   :  { %200 = vsyncadd [#allocation4], 192  ;;  %s203_s12 = sshll.u32 %s449_s5, 4  ;;  %s383_s13 = smov [#allocation8]   ;;  %s204_s12 = int_to_ptr.hbm [resolvable:$true] %s203_s12 }
 0x12d   :  { %s201_s14 = sshll.u32 %s383_s13, 4  ;;  %s202_s14 = int_to_ptr.vmem [resolvable:$true] %s201_s14 }
 0x12e   :  { %209 = dma.vmem_to_hbm [thread:$0]  %s202_s14, 64, %s204_s12, [#allocation4], %s379_s26, %s379_s26, %s380_s27  }
 0x12f   :  { %376 = dma.done.wait [#allocation4], 256  }
 0x130   :  { %377 = vsyncadd [#allocation4], 4294967040 }
 0x131   :  { %214 = vsyncpa [#allocation3], 1 }
 0x132   :  { %215 = vsyncpa [#allocation6], 1 }
 0x133   :  { %216 = vsyncpa [#allocation4], 1 }

// kernel: tpu_custom_call.1
= control target key start
LH: loop header
LB: loop body
LE: loop exit
PB: predicated region body
PF: predicated region fallthrough
CT: control target
= control target key end

     0   :  { %10 = vsyncpa [#allocation3], 0  ;;  %s444_s0 = inlined_call_operand.hbm [shape: f32[4,32], index: 0, kind: input, shape index: {}]   ;;  %s445_s1 = inlined_call_operand.hbm [shape: bf16[32,128], index: 1, kind: input, shape index: {}]   ;;  %s446_s2 = inlined_call_operand.vmem [shape: f32[1,128], index: 2, kind: input, shape index: {}]   ;;  %s447_s3 = inlined_call_operand.hbm [shape: bf16[128,128], index: 3, kind: input, shape index: {}]   ;;  %s448_s4 = inlined_call_operand.vmem [shape: f32[1,128], index: 4, kind: input, shape index: {}]   ;;  %s449_s5 = inlined_call_operand.hbm [shape: f32[4,128], index: 5, kind: output, shape index: {}]  }
   0x1   :  { %11 = vsyncpa [#allocation6], 0 }
   0x2   :  { %12 = vsyncpa [#allocation4], 0 }
   0x3   :  { %16 = vsyncadd [#allocation3], 192  ;;  %s30_s20 = sshll.u32 %s445_s1, 4  ;;  %s378_s21 = smov [#allocation5]   ;;  %s31_s20 = int_to_ptr.hbm [resolvable:$true] %s30_s20 }
   0x4   :  { %s32_s22 = sshll.u32 %s378_s21, 4  ;;  %s17_s25 = sshll.u32 %s444_s0, 4  ;;  %s33_s22 = int_to_ptr.vmem [resolvable:$true] %s32_s22  ;;  %s18_s25 = int_to_ptr.hbm [resolvable:$true] %s17_s25 }
   0x5   :  { %s379_s26 = smov 64   ;;  %s380_s27 = smov 4  }
   0x6   :  { %38 = dma.hbm_to_vmem [thread:$0]  %s31_s20, 256, %s33_s22, [#allocation6], %s379_s26, %s379_s26, %s380_s27  }
   0x7   :  { %s381_s28 = smov [#allocation2]   ;;  %s45_s1 = sshll.u32 %s447_s3, 4  ;;  %s46_s1 = int_to_ptr.hbm [resolvable:$true] %s45_s1 }
   0x8   :  { %s19_s29 = sshll.u32 %s381_s28, 4  ;;  %s382_s0 = smov [#allocation7]   ;;  %s20_s29 = int_to_ptr.vmem [resolvable:$true] %s19_s29 }
   0x9   :  { %25 = dma.hbm_to_vmem [thread:$0]  %s18_s25, 64, %s20_s29, [#allocation3], %s379_s26, %s379_s26, %s380_s27  }
   0xa   :  { %s47_s7 = sshll.u32 %s382_s0, 4  ;;  %s48_s7 = int_to_ptr.vmem [resolvable:$true] %s47_s7 }
   0xb   :  { %53 = dma.hbm_to_vmem [thread:$0]  %s46_s1, 1024, %s48_s7, [#allocation6], %s379_s26, %s379_s26, %s380_s27  }
   0xc   :  { %372 = dma.done.wait [#allocation3], 256  }
   0xd   :  { %373 = vsyncadd [#allocation3], 4294967040 }
   0xe   :  { %374 = dma.done.wait [#allocation6], 1280  }
   0xf   :  { %375 = vsyncadd [#allocation6], 4294966016  ;;  %v259_v0 = vld [vmem:[#allocation5 + $0x8] sm:$0xff]  ;;  %v258_v1 = vld [vmem:[#allocation5] sm:$0xff]  ;;  %vm92_vm0 = vcmask 261120  }
  0x10   :  { %v267_v2 = vld [vmem:[#allocation7 + $0x38] sm:$0xff]  ;;  %102 = vmatpush.bf16.msra.mxu0 %v259_v0  ;;  %v69_v3 = vld [vmem:[#allocation2] sm:$0xff]  ;;  %v70_v4 = vld [vmem:[#allocation2 + $0x8] sm:$0xff] }
  0x11   :  { %181 = vmatpush.bf16.msra.mxu1 %v267_v2  ;;  %v266_v5 = vld [vmem:[#allocation7 + $0x30] sm:$0xff]  ;;  %v71_v6 = vpack.c.bf16 %v70_v4, %v69_v3  ;;  %v265_v7 = vld [vmem:[#allocation7 + $0x28] sm:$0xff]  ;;  %v264_v8 = vld [vmem:[#allocation7 + $0x20] sm:$0xff] }
  0x12   :  { %v263_v9 = vld [vmem:[#allocation7 + $0x18] sm:$0xff]  ;;  %v262_v10 = vld [vmem:[#allocation7 + $0x10] sm:$0xff]  ;;  %v261_v11 = vld [vmem:[#allocation7 + $0x8] sm:$0xff] }
  0x13   :  { %v260_v12 = vld [vmem:[#allocation7] sm:$0xff] }
  0x14   :  { %103 = vmatpush.bf16.msra.mxu0 %v258_v1  ;;  %v274_v14 = vld [vmem:[%s446_s2] ss:$0 sm:$0xff] }
  0x15   :  { %182 = vmatpush.bf16.msra.mxu1 %v266_v5  ;;  %v275_v21 = vld [vmem:[%s448_s4] ss:$0 sm:$0xff] }
  0x17   :  { %225 = vmatmul.msk.bf16.vlgmr.msra.gmra.mxu0 %vm92_vm0, %v71_v6 }
  0x19   :  { %183 = vmatpush.bf16.msra.mxu1 %v265_v7 }
  0x1d   :  { %184 = vmatpush.bf16.msra.mxu1 %v264_v8 }
  0x21   :  { %185 = vmatpush.bf16.msra.mxu1 %v263_v9 }
  0x25   :  { %186 = vmatpush.bf16.msra.mxu1 %v262_v10 }
  0x29   :  { %187 = vmatpush.bf16.msra.mxu1 %v261_v11 }
  0x2d   :  { %188 = vmatpush.bf16.msra.mxu1 %v260_v12 }
  0x94   :  { %v105_v13 = vpop.f32.mrf.mxu0 }
  0x95   :  { %v106_v15 = vadd.f32 %v274_v14, %v105_v13 }
  0x97   :  { %v110_v18 = vmax.f32 %v106_v15, 0.0 }
  0x9c   :  { %v107_v16 = vpop.f32.mrf.mxu0 }
  0x9d   :  { %v108_v17 = vadd.f32 %v274_v14, %v107_v16 }
  0x9f   :  { %v111_v19 = vmax.f32 %v108_v17, 0.0 }
  0xa1   :  { %v112_v20 = vpack.c.bf16 %v111_v19, %v110_v18 }
  0xa3   :  { %189 = vmatmul.bf16.vlgmr.msra.gmra.mxu1 %v112_v20 }
 0x120   :  { %v190_v22 = vpop.f32.mrf.mxu1 }
 0x121   :  { %v191_v23 = vadd.f32 %v275_v21, %v190_v22 }
 0x123   :  { %195 = vst [vmem:[#allocation8] sm:$0xff] %v191_v23 }
 0x128   :  { %v192_v24 = vpop.f32.mrf.mxu1 }
 0x129   :  { %v193_v25 = vadd.f32 %v275_v21, %v192_v24 }
 0x12b   :  { %196 = vst [vmem:[#allocation8 + $0x8] sm:$0xff] %v193_v25 }
 0x12c   :  { %200 = vsyncadd [#allocation4], 192  ;;  %s203_s12 = sshll.u32 %s449_s5, 4  ;;  %s383_s13 = smov [#allocation8]   ;;  %s204_s12 = int_to_ptr.hbm [resolvable:$true] %s203_s12 }
 0x12d   :  { %s201_s14 = sshll.u32 %s383_s13, 4  ;;  %s202_s14 = int_to_ptr.vmem [resolvable:$true] %s201_s14 }
 0x12e   :  { %209 = dma.vmem_to_hbm [thread:$0]  %s202_s14, 64, %s204_s12, [#allocation4], %s379_s26, %s379_s26, %s380_s27  }
 0x12f   :  { %376 = dma.done.wait [#allocation4], 256  }
 0x130   :  { %377 = vsyncadd [#allocation4], 4294967040 }
 0x131   :  { %214 = vsyncpa [#allocation3], 1 }
 0x132   :  { %215 = vsyncpa [#allocation6], 1 }
 0x133   :  { %216 = vsyncpa [#allocation4], 1 }

</bundles_post_ra>
